<compile_context>
chip_gen: v5e
topology: v5e:2x2
jax: 0.10.0
libtpu: 0.0.40
codegen_flags: <defaults>
</compile_context>

<pallas_src>
import jax
import jax.numpy as jnp
from jax.experimental import pallas as pl
from jax.experimental.pallas import tpu as pltpu

IN_FEATURES = 4
OUT_FEATURES = 2
LANE = 128
GROUP = LANE // IN_FEATURES          # 32 batch rows packed per 128-lane row
OUT_LANE = GROUP * OUT_FEATURES      # 64 output lanes per packed row


def packed_linear_kernel(x_ref, m_ref, b_ref, y_ref):
    # x_ref: (tr, 128) f32 -- 32 batch rows x 4 features per lane-row
    # m_ref: (128, 64) f32 -- kron(I_32, W^T); constant block, stays resident
    # b_ref: (1, 64)   f32 -- bias tiled across the 32 packed rows
    # y_ref: (tr, 64)  f32 -- 32 batch rows x 2 outputs per lane-row
    y = jnp.dot(x_ref[...], m_ref[...], preferred_element_type=jnp.float32)
    y_ref[...] = (y + b_ref[...]).astype(y_ref.dtype)


def simple_regressor_forward(x, weight, bias, *, tr_max=8192):
    """x: [B, 4] f32; weight: [2, 4] f32 (PyTorch layout); bias: [2] f32.
    Returns [B, 2] == x @ weight.T + bias."""
    B = x.shape[0]
    assert x.shape[1] == IN_FEATURES
    tr_max = max(8, (tr_max // 8) * 8)               # keep sublane-aligned tiles

    # Only a non-multiple-of-32 batch forces this (tiny) pad+copy; aligned
    # batches take the zero-copy path.
    # TODO(synk): stream the <32-row tail through the kernel instead of padding.
    b_pad = pl.cdiv(B, GROUP) * GROUP
    if b_pad != B:
        x = jnp.pad(x, ((0, b_pad - B), (0, 0)))
    R = b_pad // GROUP                               # packed 128-lane rows

    # Free row-major reshape: [b_pad, 4] -> [R, 128] (bitcast, no HBM pass).
    x_packed = x.reshape(R, LANE)

    # Block-diagonal packed weight: M[4j+k, 2j+o] = W[o, k]; bias tiled to lanes.
    m = jnp.kron(jnp.eye(GROUP, dtype=weight.dtype), weight.T)   # (128, 64)
    b_packed = jnp.tile(bias, GROUP).reshape(1, OUT_LANE)        # (1, 64)

    # Row-tile size: as large as possible (MB-class DMAs), but >= 2 tiles when
    # the batch allows so v7x's two TensorCores both get work.
    if R <= 8:
        tr = R                                       # single (full-extent) block
    else:
        tr = min(tr_max, pl.cdiv(pl.cdiv(R, 2), 8) * 8)
    num_tiles = pl.cdiv(R, tr)

    # Triple-buffer the streamed input only when the grid is long enough for it
    # to matter (helps hide DMA latency on v5e's slower HBM).
    if num_tiles >= 3:
        x_spec = pl.BlockSpec((tr, LANE), lambda i: (i, 0),
                              pipeline_mode=pl.Buffered(3))
    else:
        x_spec = pl.BlockSpec((tr, LANE), lambda i: (i, 0))

    y_packed = pl.pallas_call(
        packed_linear_kernel,
        out_shape=jax.ShapeDtypeStruct((R, OUT_LANE), x.dtype),
        grid_spec=pltpu.PrefetchScalarGridSpec(
            num_scalar_prefetch=0,
            grid=(num_tiles,),
            in_specs=[
                x_spec,
                pl.BlockSpec((LANE, OUT_LANE), lambda i: (0, 0)),  # resident M
                pl.BlockSpec((1, OUT_LANE), lambda i: (0, 0)),     # resident bias
            ],
            out_specs=pl.BlockSpec((tr, OUT_LANE), lambda i: (i, 0)),
        ),
        compiler_params=pltpu.CompilerParams(
            dimension_semantics=("parallel",),       # shard batch tiles over TCs
            vmem_limit_bytes=32 * 1024 * 1024,       # working set ~20 MiB max
        ),
        # Advisory: purely bandwidth-bound custom call (~24 B and ~16 flops/row).
        cost_estimate=pl.CostEstimate(
            flops=16 * B, transcendentals=0, bytes_accessed=24 * B),
    )(x_packed, m, b_packed)

    # Free row-major reshape back: [R, 64] -> [b_pad, 2] (bitcast).
    y = y_packed.reshape(b_pad, OUT_FEATURES)
    return y[:B] if b_pad != B else y


if __name__ == "__main__":
    key = jax.random.PRNGKey(0)
    kx, kw, kb = jax.random.split(key, 3)

    bound = 1.0 / (IN_FEATURES ** 0.5)
    weight = jax.random.uniform(
        kw, (OUT_FEATURES, IN_FEATURES), jnp.float32, minval=-bound, maxval=bound
    )
    bias = jax.random.uniform(
        kb, (OUT_FEATURES,), jnp.float32, minval=-bound, maxval=bound
    )

    # Aligned batch: 512 rows -> 16 packed rows -> 2 grid steps (both v7x TCs).
    batch = 512
    x = jax.random.normal(kx, (batch, IN_FEATURES), jnp.float32)
    out = jax.block_until_ready(simple_regressor_forward(x, weight, bias))
    ref = x @ weight.T + bias
    assert out.shape == (batch, OUT_FEATURES)
    assert jnp.allclose(out, ref, atol=1e-5, rtol=1e-5)

    # Ragged batch (not a multiple of 32): exercises the pad/slice fallback.
    batch2 = 100
    x2 = jax.random.normal(kx, (batch2, IN_FEATURES), jnp.float32)
    out2 = jax.block_until_ready(simple_regressor_forward(x2, weight, bias))
    ref2 = x2 @ weight.T + bias
    assert out2.shape == (batch2, OUT_FEATURES)
    assert jnp.allclose(out2, ref2, atol=1e-5, rtol=1e-5)

    print("KERNEL_OK")
</pallas_src>

<mosaic_0001>
module attributes {stable_mosaic.version = 11 : i64} {
  func.func @packed_linear_kernel(%arg0: i32, %arg1: memref<8x128xf32, #tpu.memory_space<vmem>>, %arg2: memref<128x64xf32, #tpu.memory_space<vmem>>, %arg3: memref<1x64xf32, #tpu.memory_space<vmem>>, %arg4: memref<8x64xf32, #tpu.memory_space<vmem>>) attributes {dimension_semantics = [#tpu.dimension_semantics<parallel>], iteration_bounds = array<i64: 2>, scalar_prefetch = 0 : i64, scratch_operands = 0 : i64, tpu.core_type = #tpu.core_type<tc>, window_params = [{transform_indices = @transform_0, window_bounds = array<i64: 8, 128>}, {pipeline_mode = #tpu.pipeline_mode<synchronous>, transform_indices = @transform_1, window_bounds = array<i64: 128, 64>}, {pipeline_mode = #tpu.pipeline_mode<synchronous>, transform_indices = @transform_2, window_bounds = array<i64: 1, 64>}, {transform_indices = @transform_3, window_bounds = array<i64: 8, 64>}]} {
    %c0 = arith.constant 0 : index
    %c0_0 = arith.constant 0 : index
    %0 = vector.load %arg1[%c0, %c0_0] : memref<8x128xf32, #tpu.memory_space<vmem>>, vector<8x128xf32>
    %c0_1 = arith.constant 0 : index
    %c0_2 = arith.constant 0 : index
    %1 = vector.load %arg2[%c0_1, %c0_2] : memref<128x64xf32, #tpu.memory_space<vmem>>, vector<128x64xf32>
    %cst = arith.constant dense<0.000000e+00> : vector<8x64xf32>
    %2 = tpu.matmul %0, %1, %cst {dimension_numbers = #tpu.dot_dimension_numbers<[1], [0], [0], [1], [0, 0, 1, 1], [], []>} : vector<8x128xf32>, vector<128x64xf32>, vector<8x64xf32> -> vector<8x64xf32>
    %c0_3 = arith.constant 0 : index
    %c0_4 = arith.constant 0 : index
    %3 = vector.load %arg3[%c0_3, %c0_4] : memref<1x64xf32, #tpu.memory_space<vmem>>, vector<1x64xf32>
    %4 = vector.broadcast %3 : vector<1x64xf32> to vector<8x64xf32>
    %5 = arith.addf %2, %4 : vector<8x64xf32>
    %c0_5 = arith.constant 0 : index
    %c0_6 = arith.constant 0 : index
    %6 = vector.load %arg4[%c0_5, %c0_6] : memref<8x64xf32, #tpu.memory_space<vmem>>, vector<8x64xf32>
    tpu.vector_store %arg4[%c0_5, %c0_6], %5 {strides = array<i32>} : memref<8x64xf32, #tpu.memory_space<vmem>>, vector<8x64xf32>,
    return
  }
  func.func @transform_0(%arg0: i32) -> (i32, i32) {
    %c0_i32 = arith.constant 0 : i32
    %c0_i32_0 = arith.constant 0 : i32
    return %arg0, %c0_i32 : i32, i32
  }
  func.func @transform_1(%arg0: i32) -> (i32, i32) {
    %c0_i32 = arith.constant 0 : i32
    %c0_i32_0 = arith.constant 0 : i32
    %c0_i32_1 = arith.constant 0 : i32
    return %c0_i32, %c0_i32_0 : i32, i32
  }
  func.func @transform_2(%arg0: i32) -> (i32, i32) {
    %c0_i32 = arith.constant 0 : i32
    %c0_i32_0 = arith.constant 0 : i32
    %c0_i32_1 = arith.constant 0 : i32
    return %c0_i32, %c0_i32_0 : i32, i32
  }
  func.func @transform_3(%arg0: i32) -> (i32, i32) {
    %c0_i32 = arith.constant 0 : i32
    %c0_i32_0 = arith.constant 0 : i32
    return %arg0, %c0_i32 : i32, i32
  }
}

</mosaic_0001>

<bundles_post_ra>
// kernel: tpu_custom_call.1
= control target key start
LH: loop header
LB: loop body
LE: loop exit
PB: predicated region body
PF: predicated region fallthrough
CT: control target
= control target key end

     0   :  { %8 = vsyncpa [#allocation3], 0  ;;  %s554_s0 = inlined_call_operand.vmem [shape: f32[16,128], index: 0, kind: input, shape index: {}]   ;;  %s555_s1 = inlined_call_operand.vmem [shape: f32[128,64], index: 1, kind: input, shape index: {}]   ;;  %s556_s2 = inlined_call_operand.vmem [shape: f32[1,64], index: 2, kind: input, shape index: {}]   ;;  %s557_s3 = inlined_call_operand.hbm [shape: f32[16,64], index: 3, kind: output, shape index: {}]  }
   0x1   :  { %10 = vsyncpa [#allocation3 + $0x1], 0  ;;  %s418_s12 = smov 0   ;;  %s420_s13 = smov 0  }
   0x2   :  { %s422_s14 = smov 0   ;;  %s424_s15 = smov 0  }
   0x3 LB: > { %s439_s16 = sadd.s32 4294967295, %s396_s15   ;;  %s284_s17 = sadd.s32 4294967294, %s396_s15   ;;  %s396_s15 = sphi %s424_s15, %s563_s15   ;;  %s392_s14 = sphi %s422_s14, %s562_s14   ;;  %s388_s13 = sphi %s420_s13, %s561_s13   ;;  %s384_s12 = sphi %s418_s12, %s560_s12  }
   0x4   : > { %s443_s18 = sadd.s32 1, %s396_s15   ;;  %s91_s19 = sadd.s32 1, %s392_s14 }
   0x5   : > { %s88_s20 = ssub.s32 %s396_s15, %s443_s18  ;;  %p101_p0 = scmp.ne.s32.totalorder %s392_s14, %s388_s13 }
   0x6   : > { %p89_p1 = scmp.eq.s32.totalorder %s88_s20, 0  ;;  %p102_p2 = scmp.eq.s32.totalorder %s439_s16, 1 }
   0x7   : > { %p107_p3 = scmp.ne.s32.totalorder %s388_s13, %s384_s12  ;;  %p108_p4 = scmp.eq.s32.totalorder %s284_s17, 1 }
   0x8   : > { %s454_s21 = scalar_select %p89_p1, %s392_s14, %s91_s19  }
   0x9   : > { %p456_p5 = por %p102_p2, %p101_p0  ;;  %p460_p6 = por %p108_p4, %p107_p3 }
   0xa   : > { %p287_p7 = scmp.ge.s32.totalorder %s396_s15, 1  ;;  %p139_p8 = scmp.lt.s32.totalorder %s396_s15, 3 }
   0xc   : > { %p140_p9 = pnand %p287_p7, %p139_p8 }
   0xd   : > { %p162_p10 = scmp.lt.s32.totalorder (!%p140_p9), %s439_s16, 1  ;;  %s159_s25 = sand.u32 (!%p140_p9), 1, %s388_s13  }
   0xe   : > { %143 = sbr.rel (%p140_p9) target bundleno = 182 (0xb6), region = 32  ;;  %s288_s26 = sshll.u32 (!%p140_p9), %s159_s25, 3 }
   0xf   : > { %s291_s27 = sshll.u32 (!%p140_p9), %s439_s16, 3  ;;  %s210_s9 = scalar_lea.sflag (!%p140_p9), [#allocation3], %s159_s25 }
  0x10   : > { %s220_s30 = scalar_lea.hbm (!%p140_p9), %s557_s3, %s291_s27 }
  0x11   : > { %s224_s8 = sshll.u32 (!%p140_p9), %s220_s30, 4  ;;  %s225_s8 = int_to_ptr.hbm [resolvable:$true] %s224_s8 }
  0x13   : > { %v182_v0 = vld [vmem:[%s555_s1 + $0x78] sm:$0xff]  ;;  %v181_v1 = vld [vmem:[%s555_s1 + $0x70] sm:$0xff]  ;;  %v180_v2 = vld [vmem:[%s555_s1 + $0x68] sm:$0xff]  ;;  %s163_s28 = scalar_select %p162_p10, %s439_s16, 1  ;;  %vm207_vm0 = vcmask 523264  }
  0x14   : > { %187 = vmatpush.msra.mxu0 %v182_v0  ;;  %v179_v3 = vld [vmem:[%s555_s1 + $0x60] sm:$0xff]  ;;  %v178_v4 = vld [vmem:[%s555_s1 + $0x58] sm:$0xff]  ;;  %v177_v5 = vld [vmem:[%s555_s1 + $0x50] sm:$0xff]  ;;  %s348_s16 = sshra.s32 %s225_s8, 4  ;;  %s349_s16 = int_to_ptr.hbm [resolvable:$true] %s348_s16 }
  0x15   : > { %v176_v6 = vld [vmem:[%s555_s1 + $0x48] sm:$0xff]  ;;  %v175_v7 = vld [vmem:[%s555_s1 + $0x40] sm:$0xff]  ;;  %v174_v8 = vld [vmem:[%s555_s1 + $0x38] sm:$0xff]  ;;  %s289_s6 = sshll.u32 %s163_s28, 3  ;;  %s350_s10 = scalar_lea.hbm %s349_s16, 8 }
  0x16   : > { %188 = vmatpush.msra.mxu0 %v181_v1  ;;  %v173_v9 = vld [vmem:[%s555_s1 + $0x30] sm:$0xff]  ;;  %v172_v10 = vld [vmem:[%s555_s1 + $0x28] sm:$0xff]  ;;  %v171_v11 = vld [vmem:[%s555_s1 + $0x20] sm:$0xff]  ;;  %s165_s19 = scalar_lea.vmem %s554_s0, %s289_s6  ;;  %s161_s6 = scalar_lea.vmem [#allocation2], %s288_s26 }
  0x17   : > { %v170_v12 = vld [vmem:[%s555_s1 + $0x18] sm:$0xff]  ;;  %v169_v13 = vld [vmem:[%s555_s1 + $0x10] sm:$0xff]  ;;  %v168_v14 = vld [vmem:[%s555_s1 + $0x8] sm:$0xff]  ;;  %s222_s7 = sshll.u32 %s161_s6, 4  ;;  %p351_p11 = scmp.ne.s32.totalorder %s349_s16, %s350_s10  ;;  %s223_s7 = int_to_ptr.vmem [resolvable:$true] %s222_s7 }
  0x18   : > { %189 = vmatpush.msra.mxu0 %v180_v2  ;;  %v167_v15 = vld [vmem:[%s555_s1] sm:$0xff]  ;;  %p355_p0 = scmp.lt.s32.totalorder %s349_s16, %s557_s3 }
  0x19   : > { %v166_v16 = vld [vmem:[%s165_s19] sm:$0xff]  ;;  %p352_p12 = pnand %p351_p11, %p456_p5  ;;  %s354_s19 = scalar_lea.hbm %s557_s3, 16 }
  0x1a   : > { %190 = vmatpush.msra.mxu0 %v179_v3  ;;  %v333_v17 = vld [vmem:[%s556_s2] ss:$0 sm:$0xff]  ;;  %p356_p1 = scmp.lt.s32.totalorder %s354_s19, %s350_s10 }
  0x1b   : > { %p353_p13 = pneg %p352_p12 }
  0x1c   : > { %191 = vmatpush.msra.mxu0 %v178_v4  ;;  %p357_p2 = por %p356_p1, %p355_p0 }
  0x1e   : > { %192 = vmatpush.msra.mxu0 %v177_v5  ;;  %p358_p3 = pnand %p357_p2, %p353_p13 }
  0x20   : > { %193 = vmatpush.msra.mxu0 %v176_v6 }
  0x22   : > { %194 = vmatpush.msra.mxu0 %v175_v7 }
  0x24   : > { %195 = vmatpush.msra.mxu0 %v174_v8 }
  0x26   : > { %196 = vmatpush.msra.mxu0 %v173_v9 }
  0x28   : > { %197 = vmatpush.msra.mxu0 %v172_v10 }
  0x2a   : > { %198 = vmatpush.msra.mxu0 %v171_v11 }
  0x2c   : > { %199 = vmatpush.msra.mxu0 %v170_v12 }
  0x2e   : > { %200 = vmatpush.msra.mxu0 %v169_v13 }
  0x30   : > { %201 = vmatpush.msra.mxu0 %v168_v14 }
  0x32   : > { %202 = vmatpush.msra.mxu0 %v167_v15 }
  0x33   : > { %203 = vmatmul.f32.vlgmr.msra.gmra.mxu0 %v166_v16 }
  0xb0   : > { %v204_v18 = vpop.f32.mrf.mxu0 }
  0xb1   : > { %v205_v19 = vadd.f32 %v333_v17, %v204_v18 }
  0xb3   : > { %208 = vst.msk [vmem:[%s161_s6] sm:$0xff] %vm207_vm0, %v205_v19 }
  0xb4   : > { %361 = shalt.err (!%p358_p3)
}
  0xb5   : > { %294 = dma.vmem_to_hbm [thread:$0]  (%p456_p5), %s223_s7, 128, %s225_s8, %s210_s9  }
  0xb6 PF: > { %p300_p4 = scmp.ge.s32.totalorder %s396_s15, 2  ;;  %s236_s25 = sand.u32 1, %s384_s12  }
  0xb7   : > { %s237_s26 = scalar_lea.sflag [#allocation3], %s236_s25 }
  0xb8   : > { %p297_p7 = pnand %p300_p4, %p460_p6 }
  0xba   : > { %p298_p8 = pneg %p297_p7 }
  0xbc   : > { %379 = dma.done.wait (%p298_p8), %s237_s26, 128  }
  0xbd   : > { %381 = vsyncadd (%p298_p8), %s237_s26, 4294967168  ;;  %p13_p9 = scmp.ge.s32.totalorder %s443_s18, 4   ;;  %s560_s12 = smov %s388_s13 }
  0xbe   : > { %s561_s13 = smov %s392_s14  ;;  %s562_s14 = smov %s454_s21 }
  0xbf   : > { %s563_s15 = smov %s443_s18  ;;  %15 = sbr.rel (!%p13_p9) target bundleno = 3 (0x3), region = 67 }
  0xc4   :  { %243 = vsyncpa [#allocation3], 1 }
  0xc5   :  { %245 = vsyncpa [#allocation3 + $0x1], 1 }

</bundles_post_ra>
